<compile_context>
chip_gen: v7x
topology: tpu7x:2x2x1
jax: 0.10.0
libtpu: 0.0.40
codegen_flags: <defaults>
</compile_context>

<pallas_src>
import functools

import jax
import jax.numpy as jnp
from jax.experimental import pallas as pl
from jax.experimental.pallas import tpu as pltpu


def _attention_kernel(q_ref, w_ref, k_ref, v_ref, bias_ref, out_ref, attn_ref,
                      *, approx_recip=True):
    # Per-(batch, q-tile) tiles:
    #   q_ref:    (1, tq, Dq)         bf16
    #   w_ref:    (Dq, Dk)            bf16  (W^T of the nn.Linear weight)
    #   k_ref:    (1, Tk_pad, Dk)     bf16
    #   v_ref:    (1, Tk_pad, Dv_pad) bf16
    #   bias_ref: (1, 1, Tk_pad)      f32   (0 valid, -1e30 masked/padded)
    #   out_ref:  (1, tq, Dv_pad)
    #   attn_ref: (1, tq, Tk_pad)
    q = q_ref[0]                       # (tq, Dq)
    k = k_ref[0]                       # (Tk_pad, Dk)
    v = v_ref[0]                       # (Tk_pad, Dv_pad)
    bias = bias_ref[0]                 # (1, Tk_pad)

    # input_proj (bias=False): q @ W^T with f32 accumulation on the MXU.
    qp = jnp.dot(q, w_ref[...], preferred_element_type=jnp.float32)   # (tq, Dk)

    # scores = qp @ K^T via a (1,1)-contraction (the standard "trans-B"
    # dimension numbers used by the TPU flash-attention kernel) so K is used
    # in its stored layout.
    s = jax.lax.dot_general(
        qp.astype(k.dtype), k,
        dimension_numbers=(((1,), (1,)), ((), ())),
        preferred_element_type=jnp.float32)                            # (tq, Tk_pad)

    # masked_fill(...) replaced by an additive large-negative bias.
    s = s + bias

    # Softmax over keys (f32 elementwise; exp(-huge) underflows to exactly 0
    # for masked and padded key positions).
    row_max = jnp.max(s, axis=-1, keepdims=True)
    e = jnp.exp(s - row_max)
    denom = jnp.sum(e, axis=-1, keepdims=True)
    p = e * pl.reciprocal(denom, approx=approx_recip)                  # (tq, Tk_pad)

    # One cast of the probabilities to the MXU dtype, reused for the attn
    # store and the output matmul.
    p_b = p.astype(v.dtype)
    if jnp.dtype(attn_ref.dtype) == jnp.dtype(v.dtype):
        attn_ref[0] = p_b
    else:
        attn_ref[0] = p.astype(attn_ref.dtype)

    # Output: attn @ V with bf16 operands / f32 accumulation.
    out = jnp.dot(p_b, v, preferred_element_type=jnp.float32)
    out_ref[0] = out.astype(out_ref.dtype)


def _round_up(x, m):
    return ((x + m - 1) // m) * m


def _vmem_capacity_bytes(default=64 << 20):
    """Per-core VMEM capacity; conservative (v7x-safe) fallback if unknown."""
    try:
        info = pltpu.get_tpu_info()
        cap = int(getattr(info, "vmem_capacity_bytes", 0) or 0)
        if cap > 0:
            return cap
    except Exception:
        pass
    return default


def general_attention(queries, keys, values, mask, w_proj,
                      *, attn_dtype=jnp.bfloat16, seq_first_outputs=True):
    """queries: (T_q, N, Dq), keys: (T_k, N, Dk), values: (T_k, N, Dv),
    mask: (T_k, N) bool (True = masked), w_proj: (Dk, Dq) nn.Linear weight.

    Returns (x, attn). x has queries.dtype; attn is attn_dtype (bf16 default).
    seq_first_outputs=True matches the PyTorch module's (T, N, ...) layout;
    pass False to skip an extra full HBM read+write pass over attn/x."""
    T_q, N, Dq = queries.shape
    T_k, _, Dk = keys.shape
    Dv = values.shape[-1]
    out_dtype = queries.dtype
    compute_dtype = jnp.bfloat16

    # Lane-dense padding for outputs (and MXU-friendly key axis).
    T_k_pad = _round_up(T_k, 128)
    Dv_pad = _round_up(Dv, 128)

    # Generation-aware VMEM cap: ~0.78*capacity with 20 MiB headroom.
    vmem_cap = _vmem_capacity_bytes()
    hard_cap = max(32 << 20, min(int(vmem_cap * 0.78), vmem_cap - (20 << 20)))
    big_vmem = vmem_cap >= (100 << 20)      # v5e/v6e (128 MiB) vs v7x (64 MiB/TC)

    # q-tile size: multiple of 8 sublanes; larger on 128 MiB-VMEM generations
    # so the MXU M dim is filled and per-batch K/V DMAs are amortized.
    score_budget = (8 << 20) if big_vmem else (2 << 20)   # f32 (tq, Tk_pad)
    tq_cap = 512 if big_vmem else 256
    tq = min(tq_cap, max(8, score_budget // (T_k_pad * 4)))
    tq = max(8, (tq // 8) * 8)
    tq = min(tq, _round_up(T_q, 8))

    out_isz = jnp.dtype(out_dtype).itemsize
    attn_isz = jnp.dtype(attn_dtype).itemsize
    cd_isz = jnp.dtype(compute_dtype).itemsize

    def vmem_needed(tq_):
        # Double-buffered pipelined block I/O + ~4 f32 softmax temporaries.
        # TODO(synk): on v7x, single-buffer K/V/W (pipeline_mode=pl.Buffered(1))
        # since their block index is constant across the inner qi axis.
        per_step_io = (tq_ * Dq * cd_isz + Dq * Dk * cd_isz
                       + T_k_pad * Dk * cd_isz + T_k_pad * Dv_pad * cd_isz
                       + T_k_pad * 4
                       + tq_ * Dv_pad * out_isz + tq_ * T_k_pad * attn_isz)
        return 2 * per_step_io + 4 * tq_ * T_k_pad * 4

    # Shrink tq until the per-step footprint fits under the per-core cap
    # (matters on v7x's 64 MiB for long T_k).
    while tq > 8 and vmem_needed(tq) + (8 << 20) > hard_cap:
        tq = max(8, ((tq // 2) // 8) * 8)

    T_q_pad = _round_up(T_q, tq)
    n_q = T_q_pad // tq
    vmem_limit = int(min(max(vmem_needed(tq) + (8 << 20), 32 << 20), hard_cap))

    # Batch-first + bf16 operands (transpose, cast and zero-pad fuse in XLA).
    q_b = jnp.transpose(queries, (1, 0, 2)).astype(compute_dtype)   # (N, T_q, Dq)
    k_b = jnp.transpose(keys, (1, 0, 2)).astype(compute_dtype)      # (N, T_k, Dk)
    v_b = jnp.transpose(values, (1, 0, 2)).astype(compute_dtype)    # (N, T_k, Dv)
    w_t = jnp.transpose(w_proj, (1, 0)).astype(compute_dtype)       # (Dq, Dk)

    q_b = jnp.pad(q_b, ((0, 0), (0, T_q_pad - T_q), (0, 0)))
    k_b = jnp.pad(k_b, ((0, 0), (0, T_k_pad - T_k), (0, 0)))
    v_b = jnp.pad(v_b, ((0, 0), (0, T_k_pad - T_k), (0, Dv_pad - Dv)))

    # Additive mask bias; padded key positions are always masked out.
    m_b = jnp.transpose(mask, (1, 0))                                # (N, T_k)
    bias_b = jnp.where(m_b, jnp.float32(-1e30), jnp.float32(0.0))
    bias_b = jnp.pad(bias_b, ((0, 0), (0, T_k_pad - T_k)), constant_values=-1e30)
    bias_b = bias_b.reshape(N, 1, T_k_pad)

    kernel = functools.partial(_attention_kernel, approx_recip=(attn_isz < 4))

    out_b, attn_b = pl.pallas_call(
        kernel,
        out_shape=(
            jax.ShapeDtypeStruct((N, T_q_pad, Dv_pad), out_dtype),
            jax.ShapeDtypeStruct((N, T_q_pad, T_k_pad), attn_dtype),
        ),
        grid_spec=pltpu.PrefetchScalarGridSpec(
            num_scalar_prefetch=0,
            grid=(N, n_q),
            in_specs=[
                pl.BlockSpec((1, tq, Dq), lambda b, qi: (b, qi, 0)),
                pl.BlockSpec((Dq, Dk), lambda b, qi: (0, 0)),
                pl.BlockSpec((1, T_k_pad, Dk), lambda b, qi: (b, 0, 0)),
                pl.BlockSpec((1, T_k_pad, Dv_pad), lambda b, qi: (b, 0, 0)),
                pl.BlockSpec((1, 1, T_k_pad), lambda b, qi: (b, 0, 0)),
            ],
            out_specs=[
                pl.BlockSpec((1, tq, Dv_pad), lambda b, qi: (b, qi, 0)),
                pl.BlockSpec((1, tq, T_k_pad), lambda b, qi: (b, qi, 0)),
            ],
        ),
        compiler_params=pltpu.CompilerParams(
            # Both axes parallel so megacore (v7x) can shard on N (K/V fetched
            # once per core) and fall back to qi when N is small/odd.
            dimension_semantics=("parallel", "parallel"),
            vmem_limit_bytes=vmem_limit,
        ),
    )(q_b, w_t, k_b, v_b, bias_b)

    # Strip padding.
    out_b = out_b[:, :T_q, :Dv]
    attn_b = attn_b[:, :T_q, :T_k]

    if seq_first_outputs:
        # PyTorch module returns seq-first tensors. This costs an extra HBM
        # read+write of attn (the dominant tensor); use seq_first_outputs=False
        # when the consumer accepts batch-first layout.
        return (jnp.transpose(out_b, (1, 0, 2)),
                jnp.transpose(attn_b, (1, 0, 2)))
    return out_b, attn_b


def _reference(queries, keys, values, mask, w_proj):
    """Pure-f32 reference matching the PyTorch module semantics."""
    q = jnp.einsum("tnd,kd->tnk", queries, w_proj)            # input_proj
    q = jnp.transpose(q, (1, 0, 2))                            # (N, T_q, Dk)
    k = jnp.transpose(keys, (1, 2, 0))                         # (N, Dk, T_k)
    v = jnp.transpose(values, (1, 0, 2))                       # (N, T_k, Dv)
    m = jnp.transpose(mask, (1, 0))                            # (N, T_k)
    scores = jnp.einsum("nqd,ndk->nqk", q, k)
    scores = jnp.where(m[:, None, :], -jnp.inf, scores)
    attn = jax.nn.softmax(scores, axis=-1)
    x = jnp.einsum("nqk,nkd->nqd", attn, v)
    return jnp.transpose(x, (1, 0, 2)), jnp.transpose(attn, (1, 0, 2))


if __name__ == "__main__":
    # Small deterministic shapes consistent with the module.
    T_q, T_k, N = 8, 16, 2
    query_dim, key_dim, value_dim = 32, 32, 32

    key = jax.random.PRNGKey(0)
    kq, kk, kv, kw, km = jax.random.split(key, 5)

    queries = jax.random.normal(kq, (T_q, N, query_dim), dtype=jnp.float32)
    keys = jax.random.normal(kk, (T_k, N, key_dim), dtype=jnp.float32)
    values = jax.random.normal(kv, (T_k, N, value_dim), dtype=jnp.float32)
    # input_proj weight: nn.Linear(query_dim, key_dim, bias=False), U(-0.1, 0.1)
    w_proj = jax.random.uniform(
        kw, (key_dim, query_dim), minval=-0.1, maxval=0.1, dtype=jnp.float32
    )
    # Boolean padding mask (T_k, N); True = masked. Keep at least one valid key.
    mask = jax.random.bernoulli(km, p=0.25, shape=(T_k, N))
    mask = mask.at[0, :].set(False)

    x, attn = general_attention(queries, keys, values, mask, w_proj)
    jax.block_until_ready((x, attn))

    x_ref, attn_ref = _reference(queries, keys, values, mask, w_proj)

    assert x.shape == (T_q, N, value_dim)
    assert attn.shape == (T_q, N, T_k)

    x32 = x.astype(jnp.float32)
    a32 = attn.astype(jnp.float32)
    assert not bool(jnp.any(jnp.isnan(x32)))
    assert not bool(jnp.any(jnp.isnan(a32)))
    # attn rows are probability distributions over the (unpadded) keys.
    assert jnp.allclose(jnp.sum(a32, axis=-1), 1.0, atol=2e-2)
    # bf16 MXU operands + bf16 attn output -> bf16-level tolerances vs f32 ref.
    assert jnp.allclose(a32, attn_ref, atol=3e-2, rtol=5e-2)
    assert jnp.allclose(x32, x_ref, atol=5e-2, rtol=5e-2)

    print("KERNEL_OK")
</pallas_src>

<mosaic_0001>
module attributes {stable_mosaic.version = 11 : i64} {
  func.func @_attention_kernel(%arg0: i32, %arg1: i32, %arg2: memref<1x8x32xbf16, #tpu.memory_space<vmem>>, %arg3: memref<32x32xbf16, #tpu.memory_space<vmem>>, %arg4: memref<1x128x32xbf16, #tpu.memory_space<vmem>>, %arg5: memref<1x128x128xbf16, #tpu.memory_space<vmem>>, %arg6: memref<1x1x128xf32, #tpu.memory_space<vmem>>, %arg7: memref<1x8x128xf32, #tpu.memory_space<vmem>>, %arg8: memref<1x8x128xbf16, #tpu.memory_space<vmem>>) attributes {dimension_semantics = [#tpu.dimension_semantics<parallel>, #tpu.dimension_semantics<parallel>], iteration_bounds = array<i64: 2, 1>, scalar_prefetch = 0 : i64, scratch_operands = 0 : i64, tpu.core_type = #tpu.core_type<tc>, window_params = [{transform_indices = @transform_0, window_bounds = array<i64: 1, 8, 32>}, {pipeline_mode = #tpu.pipeline_mode<synchronous>, transform_indices = @transform_1, window_bounds = array<i64: 32, 32>}, {transform_indices = @transform_2, window_bounds = array<i64: 1, 128, 32>}, {transform_indices = @transform_3, window_bounds = array<i64: 1, 128, 128>}, {transform_indices = @transform_4, window_bounds = array<i64: 1, 1, 128>}, {transform_indices = @transform_5, window_bounds = array<i64: 1, 8, 128>}, {transform_indices = @transform_6, window_bounds = array<i64: 1, 8, 128>}]} {
    %c0 = arith.constant 0 : index
    %c0_0 = arith.constant 0 : index
    %c0_1 = arith.constant 0 : index
    %0 = vector.load %arg2[%c0, %c0_0, %c0_1] : memref<1x8x32xbf16, #tpu.memory_space<vmem>>, vector<1x8x32xbf16>
    %1 = vector.shape_cast %0 : vector<1x8x32xbf16> to vector<8x32xbf16>
    %c0_2 = arith.constant 0 : index
    %c0_3 = arith.constant 0 : index
    %c0_4 = arith.constant 0 : index
    %2 = vector.load %arg4[%c0_2, %c0_3, %c0_4] : memref<1x128x32xbf16, #tpu.memory_space<vmem>>, vector<1x128x32xbf16>
    %3 = vector.shape_cast %2 : vector<1x128x32xbf16> to vector<128x32xbf16>
    %c0_5 = arith.constant 0 : index
    %c0_6 = arith.constant 0 : index
    %c0_7 = arith.constant 0 : index
    %4 = vector.load %arg5[%c0_5, %c0_6, %c0_7] : memref<1x128x128xbf16, #tpu.memory_space<vmem>>, vector<1x128x128xbf16>
    %5 = vector.shape_cast %4 : vector<1x128x128xbf16> to vector<128x128xbf16>
    %c0_8 = arith.constant 0 : index
    %c0_9 = arith.constant 0 : index
    %c0_10 = arith.constant 0 : index
    %6 = vector.load %arg6[%c0_8, %c0_9, %c0_10] : memref<1x1x128xf32, #tpu.memory_space<vmem>>, vector<1x1x128xf32>
    %7 = vector.shape_cast %6 : vector<1x1x128xf32> to vector<1x128xf32>
    %c0_11 = arith.constant 0 : index
    %c0_12 = arith.constant 0 : index
    %8 = vector.load %arg3[%c0_11, %c0_12] : memref<32x32xbf16, #tpu.memory_space<vmem>>, vector<32x32xbf16>
    %cst = arith.constant dense<0.000000e+00> : vector<8x32xf32>
    %9 = tpu.matmul %1, %8, %cst {dimension_numbers = #tpu.dot_dimension_numbers<[1], [0], [0], [1], [0, 0, 1, 1], [], []>} : vector<8x32xbf16>, vector<32x32xbf16>, vector<8x32xf32> -> vector<8x32xf32>
    %10 = arith.truncf %9 : vector<8x32xf32> to vector<8x32xbf16>
    %cst_13 = arith.constant dense<0.000000e+00> : vector<8x128xf32>
    %11 = tpu.matmul %10, %3, %cst_13 {dimension_numbers = #tpu.dot_dimension_numbers<[1], [1], [0], [0], [0, 0, 1, 0], [], []>} : vector<8x32xbf16>, vector<128x32xbf16>, vector<8x128xf32> -> vector<8x128xf32>
    %12 = vector.broadcast %7 : vector<1x128xf32> to vector<8x128xf32>
    %13 = arith.addf %11, %12 : vector<8x128xf32>
    %cst_14 = arith.constant dense<0xFF800000> : vector<8xf32>
    %14 = vector.multi_reduction <maximumf>, %13, %cst_14 [1] : vector<8x128xf32> to vector<8xf32>
    %15 = vector.shape_cast %14 : vector<8xf32> to vector<8x1xf32>
    %16 = vector.broadcast %15 : vector<8x1xf32> to vector<8x128xf32>
    %17 = arith.subf %13, %16 : vector<8x128xf32>
    %18 = math.exp %17 : vector<8x128xf32>
    %cst_15 = arith.constant dense<0.000000e+00> : vector<8xf32>
    %19 = vector.multi_reduction <add>, %18, %cst_15 [1] : vector<8x128xf32> to vector<8xf32>
    %20 = vector.shape_cast %19 : vector<8xf32> to vector<8x1xf32>
    %21 = tpu.reciprocal %20 {approx = true} : vector<8x1xf32> -> vector<8x1xf32>
    %22 = vector.broadcast %21 : vector<8x1xf32> to vector<8x128xf32>
    %23 = arith.mulf %18, %22 : vector<8x128xf32>
    %24 = arith.truncf %23 : vector<8x128xf32> to vector<8x128xbf16>
    %c0_16 = arith.constant 0 : index
    %c0_17 = arith.constant 0 : index
    %c0_18 = arith.constant 0 : index
    %25 = vector.load %arg8[%c0_16, %c0_17, %c0_18] : memref<1x8x128xbf16, #tpu.memory_space<vmem>>, vector<1x8x128xbf16>
    %26 = vector.shape_cast %25 : vector<1x8x128xbf16> to vector<8x128xbf16>
    %27 = vector.shape_cast %24 : vector<8x128xbf16> to vector<1x8x128xbf16>
    tpu.vector_store %arg8[%c0_16, %c0_17, %c0_18], %27 {strides = array<i32>} : memref<1x8x128xbf16, #tpu.memory_space<vmem>>, vector<1x8x128xbf16>,
    %cst_19 = arith.constant dense<0.000000e+00> : vector<8x128xf32>
    %28 = tpu.matmul %24, %5, %cst_19 {dimension_numbers = #tpu.dot_dimension_numbers<[1], [0], [0], [1], [0, 0, 1, 1], [], []>} : vector<8x128xbf16>, vector<128x128xbf16>, vector<8x128xf32> -> vector<8x128xf32>
    %c0_20 = arith.constant 0 : index
    %c0_21 = arith.constant 0 : index
    %c0_22 = arith.constant 0 : index
    %29 = vector.load %arg7[%c0_20, %c0_21, %c0_22] : memref<1x8x128xf32, #tpu.memory_space<vmem>>, vector<1x8x128xf32>
    %30 = vector.shape_cast %29 : vector<1x8x128xf32> to vector<8x128xf32>
    %31 = vector.shape_cast %28 : vector<8x128xf32> to vector<1x8x128xf32>
    tpu.vector_store %arg7[%c0_20, %c0_21, %c0_22], %31 {strides = array<i32>} : memref<1x8x128xf32, #tpu.memory_space<vmem>>, vector<1x8x128xf32>,
    return
  }
  func.func @transform_0(%arg0: i32, %arg1: i32) -> (i32, i32, i32) {
    %c0_i32 = arith.constant 0 : i32
    %c0_i32_0 = arith.constant 0 : i32
    return %arg0, %arg1, %c0_i32 : i32, i32, i32
  }
  func.func @transform_1(%arg0: i32, %arg1: i32) -> (i32, i32) {
    %c0_i32 = arith.constant 0 : i32
    %c0_i32_0 = arith.constant 0 : i32
    %c0_i32_1 = arith.constant 0 : i32
    return %c0_i32, %c0_i32_0 : i32, i32
  }
  func.func @transform_2(%arg0: i32, %arg1: i32) -> (i32, i32, i32) {
    %c0_i32 = arith.constant 0 : i32
    %c0_i32_0 = arith.constant 0 : i32
    %c0_i32_1 = arith.constant 0 : i32
    return %arg0, %c0_i32, %c0_i32_0 : i32, i32, i32
  }
  func.func @transform_3(%arg0: i32, %arg1: i32) -> (i32, i32, i32) {
    %c0_i32 = arith.constant 0 : i32
    %c0_i32_0 = arith.constant 0 : i32
    %c0_i32_1 = arith.constant 0 : i32
    return %arg0, %c0_i32, %c0_i32_0 : i32, i32, i32
  }
  func.func @transform_4(%arg0: i32, %arg1: i32) -> (i32, i32, i32) {
    %c0_i32 = arith.constant 0 : i32
    %c0_i32_0 = arith.constant 0 : i32
    %c0_i32_1 = arith.constant 0 : i32
    return %arg0, %c0_i32, %c0_i32_0 : i32, i32, i32
  }
  func.func @transform_5(%arg0: i32, %arg1: i32) -> (i32, i32, i32) {
    %c0_i32 = arith.constant 0 : i32
    %c0_i32_0 = arith.constant 0 : i32
    return %arg0, %arg1, %c0_i32 : i32, i32, i32
  }
  func.func @transform_6(%arg0: i32, %arg1: i32) -> (i32, i32, i32) {
    %c0_i32 = arith.constant 0 : i32
    %c0_i32_0 = arith.constant 0 : i32
    return %arg0, %arg1, %c0_i32 : i32, i32, i32
  }
}

</mosaic_0001>

<bundles_post_ra>
// kernel: tpu_custom_call.1
= control target key start
LH: loop header
LB: loop body
LE: loop exit
PB: predicated region body
PF: predicated region fallthrough
CT: control target
= control target key end

     0   :  { %12 = vsyncpa [#allocation3], 0  ;;  %s1379_s0 = inlined_call_operand.vmem [shape: bf16[2,8,32], index: 0, kind: input, shape index: {}]   ;;  %s1380_s1 = inlined_call_operand.vmem [shape: bf16[32,32], index: 1, kind: input, shape index: {}]   ;;  %s1381_s2 = inlined_call_operand.vmem [shape: bf16[2,128,32], index: 2, kind: input, shape index: {}]   ;;  %s1382_s3 = inlined_call_operand.vmem [shape: bf16[2,128,128], index: 3, kind: input, shape index: {}]   ;;  %s1383_s4 = inlined_call_operand.vmem [shape: f32[2,1,128], index: 4, kind: input, shape index: {}]   ;;  %s1384_s5 = inlined_call_operand.hbm [shape: f32[2,8,128], index: 5, kind: output, shape index: {0}]   ;;  %s1385_s6 = inlined_call_operand.hbm [shape: bf16[2,8,128], index: 6, kind: output, shape index: {1}]  }
   0x1   :  { %14 = vsyncpa [#allocation3 + $0x1], 0 }
   0x2   :  { %15 = vsyncpa [#allocation5], 0 }
   0x3   :  { %17 = vsyncpa [#allocation5 + $0x1], 0  ;;  %s1164_s21 = smov 0   ;;  %s1166_s22 = smov 0  }
   0x4   :  { %s1168_s23 = smov 0   ;;  %s1170_s24 = smov 0  }
   0x5   :  { %s1172_s25 = smov 0   ;;  %s1174_s26 = smov 0  }
   0x6 LB: > { %s819_s27 = sadd.s32 4294967295, %s1123_s26   ;;  %s820_s28 = sadd.s32 4294967294, %s1123_s26   ;;  %s1123_s26 = sphi %s1174_s26, %s23_s26   ;;  %s1119_s25 = sphi %s1172_s25, %s1392_s25   ;;  %s1115_s24 = sphi %s1170_s24, %s1391_s24   ;;  %s1111_s23 = sphi %s1168_s23, %s1390_s23   ;;  %s1107_s22 = sphi %s1166_s22, %s1389_s22   ;;  %s1103_s21 = sphi %s1164_s21, %s1388_s21  }
   0x7   : > { %s35_s29 = sadd.s32 1, %s1119_s25  ;;  %s171_s30 = sadd.s32 1, %s1111_s23 }
   0x8   : > { %p37_p0 = scmp.ge.s32.totalorder %s35_s29, 2  ;;  %p181_p1 = scmp.ne.s32.totalorder %s1111_s23, %s1107_s22 }
   0x9   : > { %p182_p2 = scmp.eq.s32.totalorder %s819_s27, 1  ;;  %p187_p3 = scmp.ne.s32.totalorder %s1107_s22, %s1103_s21 }
   0xa   : > { %s1394_s29 = smov (%p37_p0, %s35_s29), 0  ;;  %p188_p5 = scmp.eq.s32.totalorder %s820_s28, 1 }
   0xb   : > { %p1204_p4 = por %p182_p2, %p181_p1  ;;  %s166_s8 = ssub.s32 %s1119_s25, %s1394_s29 }
   0xc   : > { %p823_p6 = scmp.ge.s32.totalorder %s1123_s26, 1  ;;  %p169_p7 = scmp.eq.s32.totalorder %s166_s8, 0 }
   0xd   : > { %p1211_p8 = por %p188_p5, %p187_p3  ;;  %p269_p9 = scmp.lt.s32.totalorder %s1123_s26, 3 }
   0xe   : > { %s1217_s10 = scalar_select %p169_p7, %s1111_s23, %s171_s30  }
   0xf   : > { %p270_p10 = pnand %p823_p6, %p269_p9 }
  0x10   : > { %v991_v0 = vld [vmem:[%s1380_s1] sm:$0xff] (!%p270_p10)   ;;  %v1125_v1 = vmov (!%p270_p10), 0.0   ;;  %v992_v2 = vld [vmem:[%s1380_s1 + $0x8] sm:$0xff] (!%p270_p10)   ;;  %vm1126_vm0 = vmmov (!%p270_p10), 0   ;;  %p319_p11 = scmp.lt.s32.totalorder (!%p270_p10), %s1115_s24, 1  ;;  %vm390_vm1 = vcmask (!%p270_p10), 261120  }
  0x11   : > { %273 = sbr.rel (%p270_p10) target bundleno = 998 (0x3e6), region = 40  ;;  %881 = vmatprep.subr.bf16.mxu0 (!%p270_p10), %v1125_v1  ;;  %889 = vmatprep.subr.bf16.mxu1 (!%p270_p10), %v1125_v1  ;;  %s855_s19 = sshll.u32 (!%p270_p10), %s1115_s24, 6 }
  0x12   : > { %882 = vmatpush3.bf16.msra.mxu0 (!%p270_p10), %v991_v0  ;;  %885 = vmatprep.mubr.msk.bf16.mxu0 (!%p270_p10), %vm1126_vm0, %v1125_v1 }
  0x13   : > { %883 = vmatprep.subr.bf16.mxu0 (!%p270_p10), %v1125_v1  ;;  %905 = vmatprep.mubr.msk.bf16.mxu1 (!%p270_p10), %vm1126_vm0, %v1125_v1 }
  0x16   : > { %884 = vmatpush3.bf16.msra.mxu0 (!%p270_p10), %v992_v2 }
  0x17   : > { %909 = vmatprep.subr.bf16.mxu0 (!%p270_p10), %v1125_v1 }
  0x18   : > { %s1234_s15 = scalar_select %p319_p11, %s1115_s24, 1 }
  0x1a   : > { %s826_s16 = sshll.u32 %s1234_s15, 2  ;;  %s858_s17 = sshll.u32 %s1234_s15, 6 }
  0x1b   : > { %s325_s20 = scalar_lea.vmem %s1379_s0, %s826_s16  ;;  %s1244_s30 = scalar_lea.vmem %s1381_s2, %s858_s17 }
  0x1c   : > { %v340_v3 = vld [vmem:[%s325_s20] sm:$0xf]  ;;  %v994_v6 = vld [vmem:[%s1244_s30 + $0x8] sm:$0xff]   ;;  %s1257_s12 = scalar_lea.vmem %s1382_s3, %s858_s17  ;;  %v995_v8 = vld [vmem:[%s1244_s30 + $0x10] sm:$0xff]   ;;  %s338_s16 = scalar_lea.vmem %s1383_s4, %s1234_s15 }
  0x1d   : > { %886 = vmatmul.mubr.msk.bf16.vlgmr.msra.gmra.mrb[0].mxu0 %vm390_vm1, %v340_v3  ;;  %v993_v4 = vld [vmem:[%s1244_s30] sm:$0xff]   ;;  %v488_v7 = vsel %vm390_vm1, %v994_v6, 0  ;;  %v491_v9 = vsel %vm390_vm1, %v995_v8, 0  ;;  %v996_v10 = vld [vmem:[%s1244_s30 + $0x18] sm:$0xff]   ;;  %v998_v14 = vld [vmem:[%s1244_s30 + $0x28] sm:$0xff]   ;;  %s1299_s15 = sand.u32 1, %s1107_s22  }
  0x1e   : > { %925 = vmatprep.mubr.msk.bf16.mxu0 %vm1126_vm0, %v1125_v1  ;;  %v485_v5 = vsel %vm390_vm1, %v993_v4, 0  ;;  %v494_v11 = vsel %vm390_vm1, %v996_v10, 0  ;;  %v997_v12 = vld [vmem:[%s1244_s30 + $0x20] sm:$0xff]   ;;  %v500_v15 = vsel %vm390_vm1, %v998_v14, 0  ;;  %v999_v16 = vld [vmem:[%s1244_s30 + $0x30] sm:$0xff]   ;;  %v1000_v18 = vld [vmem:[%s1244_s30 + $0x38] sm:$0xff]   ;;  %s1306_s30 = scalar_lea.hbm %s1385_s6, %s855_s19 }
  0x1f   : > { %890 = vmatpush3.bf16.xpose.msra.mxu1 %v485_v5  ;;  %v497_v13 = vsel %vm390_vm1, %v997_v12, 0  ;;  %v503_v17 = vsel %vm390_vm1, %v999_v16, 0  ;;  %v506_v19 = vsel %vm390_vm1, %v1000_v18, 0  ;;  %v834_v25 = vld [vmem:[%s338_s16] ss:$0 sm:$0xff]  ;;  %v1002_v32 = vld [vmem:[%s1257_s12 + $0x8] sm:$0xff]  }
  0x20   : > { %891 = vmatprep.subr.bf16.mxu1 %v1125_v1  ;;  %v1001_v31 = vld [vmem:[%s1257_s12] sm:$0xff]   ;;  %v1003_v33 = vld [vmem:[%s1257_s12 + $0x10] sm:$0xff]   ;;  %v1004_v34 = vld [vmem:[%s1257_s12 + $0x18] sm:$0xff]   ;;  %s825_s17 = sshll.u32 %s1299_s15, 2  ;;  %s654_s8 = scalar_lea.sflag [#allocation5], %s1299_s15 }
  0x21   : > { %910 = vmatpush3.bf16.msra.mxu0 %v1001_v31  ;;  %v1005_v39 = vld [vmem:[%s1257_s12 + $0x20] sm:$0xff]   ;;  %v1006_v40 = vld [vmem:[%s1257_s12 + $0x28] sm:$0xff]   ;;  %v1007_v41 = vld [vmem:[%s1257_s12 + $0x30] sm:$0xff]   ;;  %s318_s18 = scalar_lea.vmem [#allocation4], %s825_s17 }
  0x22   : > { %911 = vmatprep.subr.bf16.mxu0 %v1125_v1  ;;  %v1008_v42 = vld [vmem:[%s1257_s12 + $0x38] sm:$0xff]   ;;  %s682_s20 = sshll.u32 %s318_s18, 4  ;;  %s1127_s12 = smov [#allocation4]   ;;  %s683_s20 = int_to_ptr.vmem [resolvable:$true] %s682_s20 }
  0x23   : > { %s1013_s11 = scalar_lea.vmem %s683_s20, 64  ;;  %s1017_s13 = sshll.u32 %s1127_s12, 4  ;;  %s1018_s13 = int_to_ptr.vmem [resolvable:$false] %s1017_s13 }
  0x24   : > { %p1014_p12 = scmp.ne.s32.totalorder %s683_s20, %s1013_s11  ;;  %s1019_s14 = scalar_lea.vmem %s1018_s13, 128 }
  0x25   : > { %912 = vmatpush3.bf16.msra.mxu0 %v1002_v32  ;;  %p1020_p1 = scmp.lt.s32.totalorder %s683_s20, %s1018_s13  ;;  %p1021_p2 = scmp.lt.s32.totalorder %s1019_s14, %s1013_s11 }
  0x26   : > { %913 = vmatprep.subr.bf16.mxu0 %v1125_v1  ;;  %p1015_p13 = pnand %p1014_p12, %p1204_p4 }
  0x27   : > { %892 = vmatpush3.bf16.xpose.msra.mxu1 %v488_v7  ;;  %p1022_p3 = por %p1021_p2, %p1020_p1 }
  0x28   : > { %893 = vmatprep.subr.bf16.mxu1 %v1125_v1  ;;  %p1016_p0 = pneg %p1015_p13 }
  0x29   : > { %914 = vmatpush3.bf16.msra.mxu0 %v1003_v33 }
  0x2a   : > { %915 = vmatprep.subr.bf16.mxu0 %v1125_v1  ;;  %p1023_p5 = pnand %p1022_p3, %p1016_p0 }
  0x2d   : > { %916 = vmatpush3.bf16.msra.mxu0 %v1004_v34 }
  0x2e   : > { %917 = vmatprep.subr.bf16.mxu0 %v1125_v1 }
  0x2f   : > { %894 = vmatpush3.bf16.xpose.msra.mxu1 %v491_v9 }
  0x30   : > { %895 = vmatprep.subr.bf16.mxu1 %v1125_v1 }
  0x31   : > { %918 = vmatpush3.bf16.msra.mxu0 %v1005_v39 }
  0x32   : > { %919 = vmatprep.subr.bf16.mxu0 %v1125_v1 }
  0x35   : > { %920 = vmatpush3.bf16.msra.mxu0 %v1006_v40 }
  0x36   : > { %921 = vmatprep.subr.bf16.mxu0 %v1125_v1 }
  0x37   : > { %896 = vmatpush3.bf16.xpose.msra.mxu1 %v494_v11 }
  0x38   : > { %897 = vmatprep.subr.bf16.mxu1 %v1125_v1 }
  0x39   : > { %922 = vmatpush3.bf16.msra.mxu0 %v1007_v41 }
  0x3a   : > { %923 = vmatprep.subr.bf16.mxu0 %v1125_v1 }
  0x3d   : > { %924 = vmatpush3.bf16.msra.mxu0 %v1008_v42 }
  0x3f   : > { %898 = vmatpush3.bf16.xpose.msra.mxu1 %v497_v13 }
  0x40   : > { %899 = vmatprep.subr.bf16.mxu1 %v1125_v1 }
  0x47   : > { %900 = vmatpush3.bf16.xpose.msra.mxu1 %v500_v15 }
  0x48   : > { %901 = vmatprep.subr.bf16.mxu1 %v1125_v1 }
  0x4f   : > { %902 = vmatpush3.bf16.xpose.msra.mxu1 %v503_v17 }
  0x50   : > { %903 = vmatprep.subr.bf16.mxu1 %v1125_v1 }
  0x57   : > { %904 = vmatpush3.bf16.xpose.msra.mxu1 %v506_v19 }
  0xf0   : > { %v428_v20 = vpop.f32.mrb[0].mxu0 }
  0xf1   : > { %v434_v21 = vpack.c.bf16 %v428_v20, %v428_v20  ;;  %v887_v22 = vpop.f32.mrb[1].mxu0 }
  0xf2   : > { %v431_v23 = vpop.f32.mrb[2].mxu0 }
  0xf3   : > { %v888_v24 = vpop.f32.mrb[3].mxu0  ;;  %906 = vmatmul.mubr.msk.bf16.vlgmr.msra.gmra.mrb[0].mxu1 %vm390_vm1, %v434_v21 }
 0x1c6   : > { %v542_v26 = vpop.f32.mrb[0].mxu1 }
 0x1c7   : > { %v543_v27 = vadd.f32 %v834_v25, %v542_v26  ;;  %v907_v28 = vpop.f32.mrb[1].mxu1 }
 0x1c8   : > { %v545_v29 = vpop.f32.mrb[2].mxu1 }
 0x1c9   : > { %548 = vmax.xlane.f32.xlu0 %v543_v27  ;;  %v908_v30 = vpop.f32.mrb[3].mxu1 }
 0x256   : > { %v549_v35 = vpop.xlane.xlu0 %548 }
 0x257   : > { %v550_v36 = vsub.f32 %v543_v27, %v549_v35 }
 0x259   : > { %v551_v37 = vmul.f32 1.442695, %v550_v36 }
 0x25b   : > { %1009 = vpow2.f32 %v551_v37 }
 0x265   : > { %v1010_v38 = vpop.eup %1009 }
 0x266   : > { %553 = vadd.xlane.f32.xlu0 %v1010_v38 }
 0x2f3   : > { %v554_v43 = vpop.xlane.xlu0 %553 }
 0x2f4   : > { %1011 = vrcp.f32 %v554_v43 }
 0x2fe   : > { %v1012_v44 = vpop.eup %1011 }
 0x2ff   : > { %v556_v45 = vmul.f32 %v1012_v44, %v1010_v38 }
 0x301   : > { %v557_v46 = vpack.c.bf16 %v556_v45, %v556_v45 }
 0x303   : > { %926 = vmatmul.mubr.bf16.vlgmr.msra.gmra.mrb[4].mxu0 %v557_v46  ;;  %558 = vst [vmem:[%s318_s18] sm:$0xf] %v557_v46 }
 0x304   : > { %1026 = shalt.err (!%p1023_p5)
}
 0x305   : > { %s1027_s16 = scalar_lea.hbm %s1306_s30, 64  ;;  %s1031_s19 = scalar_lea.hbm %s1385_s6, 128 }
 0x306   : > { %p1028_p6 = scmp.ne.s32.totalorder %s1306_s30, %s1027_s16  ;;  %p1032_p10 = scmp.lt.u32.totalorder %s1306_s30, %s1385_s6 }
 0x307   : > { %p1033_p11 = scmp.lt.u32.totalorder %s1031_s19, %s1027_s16  ;;  %p1035_p13 = scmp.lt.u32.totalorder %s1027_s16, %s1306_s30 }
 0x308   : > { %p1029_p7 = pnand %p1028_p6, %p1204_p4 }
 0x309   : > { %p1034_p12 = por %p1033_p11, %p1032_p10 }
 0x30a   : > { %p1030_p9 = pneg %p1029_p7 }
 0x30b   : > { %p1036_p0 = por %p1035_p13, %p1034_p12 }
 0x30d   : > { %p1037_p1 = pnand %p1036_p0, %p1030_p9 }
 0x30f   : > { %1040 = shalt.err (!%p1037_p1)
}
 0x310   : > { %930 = dma.vmem_to_hbm [thread:$0]  (%p1204_p4), %s683_s20, 64, %s1306_s30, %s654_s8  }
 0x311   : > { %s824_s11 = sshll.u32 %s1299_s15, 3  ;;  %s854_s14 = sshll.u32 %s1115_s24, 7 }
 0x312   : > { %s311_s12 = scalar_lea.vmem [#allocation2], %s824_s11  ;;  %s1333_s16 = scalar_lea.hbm %s1384_s5, %s854_s14 }
 0x313   : > { %s668_s13 = sshll.u32 %s311_s12, 4  ;;  %s649_s19 = scalar_lea.sflag [#allocation3], %s1299_s15  ;;  %s1328_s13 = int_to_ptr.vmem [resolvable:$true] %s668_s13 }
 0x314   : > { %s1041_s20 = scalar_lea.vmem %s1328_s13, 128  ;;  %s1128_s24 = smov [#allocation2]  }
 0x315   : > { %p1042_p2 = scmp.ne.s32.totalorder %s1328_s13, %s1041_s20  ;;  %s1045_s30 = sshll.u32 %s1128_s24, 4  ;;  %s1046_s30 = int_to_ptr.vmem [resolvable:$false] %s1045_s30 }
 0x316   : > { %s1047_s8 = scalar_lea.vmem %s1046_s30, 256  ;;  %p1048_p6 = scmp.lt.s32.totalorder %s1328_s13, %s1046_s30 }
 0x317   : > { %p1043_p3 = pnand %p1042_p2, %p1204_p4  ;;  %p1049_p7 = scmp.lt.s32.totalorder %s1047_s8, %s1041_s20 }
 0x319   : > { %p1044_p5 = pneg %p1043_p3  ;;  %p1050_p9 = por %p1049_p7, %p1048_p6 }
 0x31b   : > { %p1051_p10 = pnand %p1050_p9, %p1044_p5 }
 0x3d6   : > { %v641_v47 = vpop.f32.mrb[4].mxu0 }
 0x3d7   : > { %647 = vst [vmem:[%s311_s12] sm:$0xff] %v641_v47  ;;  %v927_v48 = vpop.f32.mrb[5].mxu0 }
 0x3d8   : > { %v644_v49 = vpop.f32.mrb[6].mxu0 }
 0x3d9   : > { %1054 = shalt.err (!%p1051_p10)
}
 0x3da   : > { %s1055_s15 = scalar_lea.hbm %s1333_s16, 128  ;;  %s1059_s11 = scalar_lea.hbm %s1384_s5, 256 }
 0x3db   : > { %p1056_p11 = scmp.ne.s32.totalorder %s1333_s16, %s1055_s15  ;;  %p1060_p0 = scmp.lt.u32.totalorder %s1333_s16, %s1384_s5 }
 0x3dc   : > { %p1061_p1 = scmp.lt.u32.totalorder %s1059_s11, %s1055_s15  ;;  %p1063_p3 = scmp.lt.u32.totalorder %s1055_s15, %s1333_s16 }
 0x3dd   : > { %p1057_p12 = pnand %p1056_p11, %p1204_p4 }
 0x3de   : > { %p1062_p2 = por %p1061_p1, %p1060_p0 }
 0x3df   : > { %p1058_p13 = pneg %p1057_p12 }
 0x3e0   : > { %p1064_p5 = por %p1063_p3, %p1062_p2 }
 0x3e2   : > { %p1065_p6 = pnand %p1064_p5, %p1058_p13 }
 0x3e4   : > { %1068 = shalt.err (!%p1065_p6)
}
 0x3e5   : > { %929 = dma.vmem_to_hbm [thread:$0]  (%p1204_p4), %s1328_s13, 128, %s1333_s16, %s649_s19   ;;  %v928_v50 = vpop.f32.mrb[7].mxu0 }
 0x3e6 PF: > { %p940_p7 = scmp.ge.s32.totalorder %s1123_s26, 2  ;;  %s694_s17 = sand.u32 1, %s1103_s21  }
 0x3e7   : > { %s695_s18 = scalar_lea.sflag [#allocation3], %s694_s17 }
 0x3e8   : > { %p934_p9 = pnand %p940_p7, %p1211_p8 }
 0x3ea   : > { %1094 = dma.done.wait (!%p934_p9), %s695_s18, 128  }
 0x3eb   : > { %1096 = vsyncadd (!%p934_p9), %s695_s18, 4294967168  ;;  %s704_s20 = scalar_lea.sflag [#allocation5], %s694_s17 }
 0x3ec   : > { %1098 = dma.done.wait (!%p934_p9), %s704_s20, 64  }
 0x3ed   : > { %1100 = vsyncadd (!%p934_p9), %s704_s20, 4294967232  ;;  %s23_s26 = sadd.s32 1, %s1123_s26   ;;  %s1388_s21 = smov %s1107_s22 }
 0x3ee   : > { %p20_p10 = scmp.ge.s32.totalorder %s23_s26, 4   ;;  %s1389_s22 = smov %s1111_s23 }
 0x3ef   : > { %s1390_s23 = smov %s1217_s10  ;;  %s1391_s24 = smov %s1119_s25 }
 0x3f0   : > { %s1392_s25 = smov %s1394_s29  ;;  %22 = sbr.rel (!%p20_p10) target bundleno = 6 (0x6), region = 101 }
 0x3f7   :  { %709 = vsyncpa [#allocation3], 1 }
 0x3f8   :  { %711 = vsyncpa [#allocation3 + $0x1], 1 }
 0x3f9   :  { %712 = vsyncpa [#allocation5], 1 }
 0x3fa   :  { %714 = vsyncpa [#allocation5 + $0x1], 1 }

</bundles_post_ra>
